<compile_context>
chip_gen: v6e
topology: v6e:2x2x1
jax: 0.10.0
libtpu: 0.0.40
codegen_flags: <defaults>
</compile_context>

<pallas_src>
import jax
import jax.numpy as jnp
from jax.experimental import pallas as pl
from jax.experimental.pallas import tpu as pltpu


def _round_up(v, m):
    return ((v + m - 1) // m) * m


def _eq_kernel(sc_ref, x_ref, yT_ref, o_ref):
    """One (tn, tm) tile of the EQ (squared-exponential) kernel matrix.

    sc_ref : (2,)     f32  SMEM   [-1/s, 2/s] (precomputed in the wrapper)
    x_ref  : (tn, D)  f32  VMEM   x tile
    yT_ref : (D, tm)  f32  VMEM   y tile, pre-transposed (lane-dense rows)
    o_ref  : (tn, tm)      VMEM   output tile
    """
    neg_inv = sc_ref[0]            # -1/s
    two_inv = sc_ref[1]            #  2/s

    x = x_ref[...]                 # (tn, D)
    yT = yT_ref[...]               # (D, tm)

    # Scale-folded squared norms:  -||x||^2/s  and  -||y||^2/s.
    xn = jnp.sum(x * x, axis=1, keepdims=True) * neg_inv      # (tn, 1)
    yn = jnp.sum(yT * yT, axis=0, keepdims=True) * neg_inv    # (1, tm)

    acc = xn + yn                                              # (tn, tm)
    # exp(-d/s) = exp(-||x||^2/s - ||y||^2/s + (2/s) * sum_k x_k y_k)
    # Tiny contraction dim (D=2..4): pure VPU rank-1 updates, MXU skipped.
    D = x.shape[1]
    for k in range(D):
        acc = acc + (x[:, k:k + 1] * two_inv) * yT[k:k + 1, :]

    o_ref[...] = jnp.exp(acc).astype(o_ref.dtype)


def multi_eq_forward(x, y, scale, l, *, fixed_scale=False,
                     tn=512, tm=2048, out_dtype=jnp.float32):
    """Pallas implementation of MultiEQKernel.forward(x, y, l)."""
    x = x.astype(jnp.float32)
    y = y.astype(jnp.float32)
    N, D = x.shape
    M, D2 = y.shape
    assert D == D2, "x and y must share the feature dimension"

    # scale[l] handling (glue stays in plain JAX).
    scale_arr = jnp.asarray(scale, dtype=jnp.float32)
    s = scale_arr if scale_arr.ndim == 0 else scale_arr[l]
    if not fixed_scale:
        s = jnp.clip(jax.nn.softplus(s), 1e-10, 10000.0)
    inv_s = 1.0 / s
    sc = jnp.stack([-inv_s, 2.0 * inv_s]).astype(jnp.float32)   # (2,) -> SMEM

    # Pre-transpose y once (tiny copy): kernel gets lane-dense (D, tm) blocks.
    yT = y.T                                                    # (D, M)

    # Tile sizes: 8-aligned on the sublane (N) axis, 128-aligned on the lane
    # (M) axis; shrink for small problems.  No output padding: ragged edge
    # blocks are handled by Pallas masked stores.
    tn_eff = max(8, min(tn, _round_up(N, 8)))
    tm_eff = max(128, min(tm, _round_up(M, 128)))
    # v7x megacore: if the whole problem would be one block, split N so both
    # TensorCores get a grid step (harmless on single-TC v5e/v6e).
    if pl.cdiv(N, tn_eff) == 1 and pl.cdiv(M, tm_eff) == 1 and N > 8:
        tn_eff = max(8, _round_up(pl.cdiv(N, 2), 8))

    grid = (pl.cdiv(N, tn_eff), pl.cdiv(M, tm_eff))

    out = pl.pallas_call(
        _eq_kernel,
        out_shape=jax.ShapeDtypeStruct((N, M), out_dtype),
        grid_spec=pl.GridSpec(
            grid=grid,
            in_specs=[
                # folded scale constants live whole in SMEM
                pl.BlockSpec(memory_space=pltpu.MemorySpace.SMEM),
                pl.BlockSpec((tn_eff, D), lambda i, j: (i, 0)),   # x tile
                pl.BlockSpec((D, tm_eff), lambda i, j: (0, j)),   # yT tile
            ],
            out_specs=pl.BlockSpec((tn_eff, tm_eff), lambda i, j: (i, j)),
        ),
        compiler_params=pltpu.CompilerParams(
            dimension_semantics=("parallel", "parallel"),
            vmem_limit_bytes=32 * 1024 * 1024),
    )(sc, x, yT)

    return out


def _reference(x, y, scale, l, fixed_scale=False):
    """Plain-JAX reference mirroring the PyTorch forward exactly."""
    sq_x = jnp.sum(x ** 2, axis=-1, keepdims=True)
    sq_y = jnp.sum(y ** 2, axis=-1, keepdims=True).T
    dot = jnp.matmul(x, y.T)
    d = sq_x + sq_y - 2.0 * dot
    scale_arr = jnp.asarray(scale, dtype=jnp.float32)
    s = scale_arr if scale_arr.ndim == 0 else scale_arr[l]
    if not fixed_scale:
        s = jnp.clip(jax.nn.softplus(s), 1e-10, 10000.0)
    return jnp.exp(-d / s)


if __name__ == "__main__":
    # Module config: MultiEQKernel(scale=1.0, fixed_scale=False, dim=4)
    # -> scale parameter = np.repeat(1.0, dim) (deterministic init, no checkpoint).
    dim = 4
    scale = jnp.full((dim,), 1.0, dtype=jnp.float32)
    l = 1
    fixed_scale = False

    key = jax.random.PRNGKey(0)
    k1, k2 = jax.random.split(key)
    # Spatial coordinate inputs x:(N,D), y:(M,D); N, M deliberately not
    # multiples of the tile sizes to exercise the ragged-edge (masked store)
    # path and a multi-block grid.
    N, M, D = 64, 48, 2
    x = jax.random.normal(k1, (N, D), dtype=jnp.float32)
    y = jax.random.normal(k2, (M, D), dtype=jnp.float32)

    out = multi_eq_forward(x, y, scale, l, fixed_scale=fixed_scale)
    out = jax.block_until_ready(out)

    ref = _reference(x, y, scale, l, fixed_scale=fixed_scale)
    if out.shape != ref.shape:
        raise AssertionError(f"shape mismatch: {out.shape} vs {ref.shape}")
    if not jnp.allclose(out, ref, atol=1e-5, rtol=1e-4):
        raise AssertionError("Pallas EQ kernel mismatch vs reference")

    print("KERNEL_OK")
</pallas_src>

<mosaic_0001>
module attributes {stable_mosaic.version = 11 : i64} {
  func.func @_eq_kernel(%arg0: i32, %arg1: i32, %arg2: memref<2xf32, #tpu.memory_space<smem>>, %arg3: memref<32x2xf32, #tpu.memory_space<vmem>>, %arg4: memref<2x128xf32, #tpu.memory_space<vmem>>, %arg5: memref<32x128xf32, #tpu.memory_space<vmem>>) attributes {dimension_semantics = [#tpu.dimension_semantics<parallel>, #tpu.dimension_semantics<parallel>], iteration_bounds = array<i64: 2, 1>, scalar_prefetch = 0 : i64, scratch_operands = 0 : i64, tpu.core_type = #tpu.core_type<tc>, window_params = [{transform_indices = @transform_0, window_bounds = array<i64: 2>}, {transform_indices = @transform_1, window_bounds = array<i64: 32, 2>}, {transform_indices = @transform_2, window_bounds = array<i64: 2, 128>}, {transform_indices = @transform_3, window_bounds = array<i64: 32, 128>}]} {
    %c0 = arith.constant 0 : index
    %0 = memref.load %arg2[%c0] : memref<2xf32, #tpu.memory_space<smem>>
    %c1 = arith.constant 1 : index
    %1 = memref.load %arg2[%c1] : memref<2xf32, #tpu.memory_space<smem>>
    %c0_0 = arith.constant 0 : index
    %c0_1 = arith.constant 0 : index
    %2 = vector.load %arg3[%c0_0, %c0_1] : memref<32x2xf32, #tpu.memory_space<vmem>>, vector<32x2xf32>
    %c0_2 = arith.constant 0 : index
    %c0_3 = arith.constant 0 : index
    %3 = vector.load %arg4[%c0_2, %c0_3] : memref<2x128xf32, #tpu.memory_space<vmem>>, vector<2x128xf32>
    %4 = arith.mulf %2, %2 : vector<32x2xf32>
    %cst = arith.constant dense<0.000000e+00> : vector<32xf32>
    %5 = vector.multi_reduction <add>, %4, %cst [1] : vector<32x2xf32> to vector<32xf32>
    %6 = vector.shape_cast %5 : vector<32xf32> to vector<32x1xf32>
    %7 = vector.broadcast %0 : f32 to vector<32x1xf32>
    %8 = arith.mulf %6, %7 : vector<32x1xf32>
    %9 = arith.mulf %3, %3 : vector<2x128xf32>
    %cst_4 = arith.constant dense<0.000000e+00> : vector<128xf32>
    %10 = vector.multi_reduction <add>, %9, %cst_4 [0] : vector<2x128xf32> to vector<128xf32>
    %11 = vector.shape_cast %10 : vector<128xf32> to vector<1x128xf32>
    %12 = vector.broadcast %0 : f32 to vector<1x128xf32>
    %13 = arith.mulf %11, %12 : vector<1x128xf32>
    %14 = vector.broadcast %8 : vector<32x1xf32> to vector<32x128xf32>
    %15 = vector.broadcast %13 : vector<1x128xf32> to vector<32x128xf32>
    %16 = arith.addf %14, %15 : vector<32x128xf32>
    %17 = vector.extract_strided_slice %2 {offsets = [0, 0], sizes = [32, 1], strides = [1, 1]} : vector<32x2xf32> to vector<32x1xf32>
    %18 = vector.broadcast %1 : f32 to vector<32x1xf32>
    %19 = arith.mulf %17, %18 : vector<32x1xf32>
    %20 = vector.extract_strided_slice %3 {offsets = [0, 0], sizes = [1, 128], strides = [1, 1]} : vector<2x128xf32> to vector<1x128xf32>
    %21 = vector.broadcast %19 : vector<32x1xf32> to vector<32x128xf32>
    %22 = vector.broadcast %20 : vector<1x128xf32> to vector<32x128xf32>
    %23 = arith.mulf %21, %22 : vector<32x128xf32>
    %24 = arith.addf %16, %23 : vector<32x128xf32>
    %25 = vector.extract_strided_slice %2 {offsets = [0, 1], sizes = [32, 1], strides = [1, 1]} : vector<32x2xf32> to vector<32x1xf32>
    %26 = vector.broadcast %1 : f32 to vector<32x1xf32>
    %27 = arith.mulf %25, %26 : vector<32x1xf32>
    %28 = vector.extract_strided_slice %3 {offsets = [1, 0], sizes = [1, 128], strides = [1, 1]} : vector<2x128xf32> to vector<1x128xf32>
    %29 = vector.broadcast %27 : vector<32x1xf32> to vector<32x128xf32>
    %30 = vector.broadcast %28 : vector<1x128xf32> to vector<32x128xf32>
    %31 = arith.mulf %29, %30 : vector<32x128xf32>
    %32 = arith.addf %24, %31 : vector<32x128xf32>
    %33 = math.exp %32 : vector<32x128xf32>
    %c0_5 = arith.constant 0 : index
    %c0_6 = arith.constant 0 : index
    %34 = vector.load %arg5[%c0_5, %c0_6] : memref<32x128xf32, #tpu.memory_space<vmem>>, vector<32x128xf32>
    tpu.vector_store %arg5[%c0_5, %c0_6], %33 {strides = array<i32>} : memref<32x128xf32, #tpu.memory_space<vmem>>, vector<32x128xf32>,
    return
  }
  func.func @transform_0(%arg0: i32, %arg1: i32) -> i32 {
    %c0_i32 = arith.constant 0 : i32
    %c0_i32_0 = arith.constant 0 : i32
    return %c0_i32 : i32
  }
  func.func @transform_1(%arg0: i32, %arg1: i32) -> (i32, i32) {
    %c0_i32 = arith.constant 0 : i32
    %c0_i32_0 = arith.constant 0 : i32
    return %arg0, %c0_i32 : i32, i32
  }
  func.func @transform_2(%arg0: i32, %arg1: i32) -> (i32, i32) {
    %c0_i32 = arith.constant 0 : i32
    %c0_i32_0 = arith.constant 0 : i32
    return %c0_i32, %arg1 : i32, i32
  }
  func.func @transform_3(%arg0: i32, %arg1: i32) -> (i32, i32) {
    %c0_i32 = arith.constant 0 : i32
    return %arg0, %arg1 : i32, i32
  }
}

</mosaic_0001>

<bundles_post_ra>
// kernel: tpu_custom_call.1
= control target key start
LH: loop header
LB: loop body
LE: loop exit
PB: predicated region body
PF: predicated region fallthrough
CT: control target
= control target key end

     0   :  { %8 = vsyncpa [#allocation3], 0  ;;  %s579_s12 = smov 0   ;;  %s581_s13 = smov 0   ;;  %s647_s0 = inlined_call_operand.vmem [shape: f32[2], index: 0, kind: input, shape index: {}]   ;;  %s648_s1 = inlined_call_operand.vmem [shape: f32[64,2], index: 1, kind: input, shape index: {}]   ;;  %s649_s2 = inlined_call_operand.vmem [shape: f32[2,48], index: 2, kind: input, shape index: {}]   ;;  %s650_s3 = inlined_call_operand.vmem [shape: f32[64,48], index: 3, kind: output, shape index: {}]  }
   0x1   :  { %s583_s14 = smov 0  }
   0x2 LB: > { %s447_s15 = sadd.s32 4294967295, %s554_s14   ;;  %s26_s16 = sadd.s32 1, %s550_s13  ;;  %s554_s14 = sphi %s583_s14, %s14_s14   ;;  %s550_s13 = sphi %s581_s13, %s654_s13   ;;  %s546_s12 = sphi %s579_s12, %s653_s12  }
   0x3   : > { %p28_p0 = scmp.ge.s32.totalorder %s26_s16, 2  ;;  %p449_p1 = scmp.ge.s32.totalorder %s554_s14, 1 }
   0x4   : > { %p132_p2 = scmp.lt.s32.totalorder %s554_s14, 3  ;;  %p604_p4 = scmp.eq.s32.totalorder %s447_s15, 0 }
   0x5   : > { %s656_s16 = smov (%p28_p0, %s26_s16), 0  ;;  %s145_s21 = sshll.u32 %s647_s0, 4  ;;  %s146_s21 = int_to_ptr.vmem [resolvable:$true] %s145_s21 }
   0x6   : > { %p600_p3 = pnand %p449_p1, %p132_p2  ;;  %s513_s22 = scalar_lea.vmem %s146_s21, 16 }
   0x7   : > { %p514_p7 = scmp.ne.s32.totalorder %s146_s21, %s513_s22  ;;  %p521_p11 = scmp.lt.s32.totalorder %s146_s21, %s146_s21 }
   0x8   : > { %p466_p5 = pneg %p600_p3  ;;  %p522_p12 = scmp.lt.s32.totalorder %s513_s22, %s513_s22 }
   0xa   : > { %p467_p6 = pnand %p604_p4, %p466_p5  ;;  %p523_p13 = por %p522_p12, %p521_p11 }
   0xc   : > { %p515_p8 = pneg %p467_p6 }
   0xe   : > { %p516_p9 = pnand %p515_p8, %p514_p7 }
  0x10   : > { %p517_p10 = pneg %p516_p9 }
  0x12   : > { %p524_p0 = pnand %p523_p13, %p517_p10 }
  0x14   : > { %527 = shalt.err (!%p524_p0)
}
  0x15   : > { %s556_s23 = smov [#allocation2]   ;;  %174 = sbr.rel (%p600_p3) target bundleno = 232 (0xe8), region = 32 }
  0x16   : > { %469 = dma.vmem_to_smem (!%p467_p6), %s146_s21, 16, %s556_s23, [#allocation3]  }
  0x1a   : > { %541 = dma.done.wait (%p604_p4), [#allocation3], 16  }
  0x1b   : > { %543 = vsyncadd (%p604_p4), [#allocation3], 4294967280 }
  0x1c   : > { %180 = sfence }
  0x1d   : > { %s455_s24 = sshll.u32 %s546_s12, 2  ;;  %v557_v0 = vmov 0   ;;  %vm236_vm0 = vcmask 15360   ;;  %s459_s29 = sld [smem:[#allocation2 + $0x1]]  ;;  %v558_v17 = vmov 1   ;;  %vm255_vm1 = vcmask 1041408  }
  0x1e   : > { %p207_p1 = scmp.lt.s32.totalorder %s455_s24, 7  ;;  %500 = vset.pattern.permute.xlu1 %v557_v0  ;;  %499 = vset.pattern.permute.xlu0 %v557_v0  ;;  %v231_v19 = vld [vmem:[%s649_s2] sm:$0x3]  ;;  %s225_s5 = sld [smem:[#allocation2]]  ;;  %v293_v26 = vlaneseq }
  0x1f   : > { %v254_v20 = vmul.f32 %v231_v19, %v231_v19 }
  0x20   : > { %s658_s24 = smov (!%p207_p1, %s455_s24), 7  ;;  %v294_v30 = vshrl.u32 %v293_v26, 7 }
  0x21   : > { %s456_s25 = sshll.u32 %s658_s24, 3  ;;  %v256_v21 = vsel %vm255_vm1, %v254_v20, 0.0 }
  0x22   : > { %s210_s28 = scalar_lea.vmem %s648_s1, %s456_s25  ;;  %v257_v22 = vrot.slane %v256_v21, 4  ;;  %v295_v35 = vsub.s32 0, %v294_v30  ;;  %v323_v39 = vsub.s32 1, %v294_v30  ;;  %s223_s8 = scalar_lea.vmem %s650_s3, %s456_s25 }
  0x23   : > { %v229_v1 = vld [vmem:[%s210_s28 + $0x10] sm:$0xff]  ;;  %v227_v2 = vld [vmem:[%s210_s28] sm:$0xff]  ;;  %v230_v3 = vld [vmem:[%s210_s28 + $0x18] sm:$0xff]  ;;  %v268_v13 = vstv %s459_s29 }
  0x24   : > { %v234_v4 = vmul.f32 %v229_v1, %v229_v1  ;;  %v232_v5 = vmul.f32 %v227_v2, %v227_v2  ;;  %v228_v6 = vld [vmem:[%s210_s28 + $0x8] sm:$0xff]  ;;  %v235_v7 = vmul.f32 %v230_v3, %v230_v3  ;;  %v271_v15 = vmul.f32 %v268_v13, %v229_v1 }
  0x25   : > { %v233_v8 = vmul.f32 %v228_v6, %v228_v6  ;;  %v270_v14 = vmul.f32 %v268_v13, %v228_v6  ;;  %v269_v16 = vmul.f32 %v268_v13, %v227_v2  ;;  %v272_v18 = vmul.f32 %v268_v13, %v230_v3 }
  0x26   : > { %v243_v9 = vsel %vm236_vm0, %v234_v4, 0.0  ;;  %v237_v10 = vsel %vm236_vm0, %v232_v5, 0.0  ;;  %v246_v11 = vsel %vm236_vm0, %v235_v7, 0.0  ;;  %v258_v23 = vadd.f32 %v257_v22, %v256_v21 }
  0x27   : > { %244 = vadd.xlane.f32.xlu1 %v243_v9  ;;  %238 = vadd.xlane.f32.xlu0 %v237_v10  ;;  %v240_v12 = vsel %vm236_vm0, %v233_v8, 0.0  ;;  %v249_v33 = vstv %s225_s5  ;;  %v296_v41 = vrot.slane %v231_v19, %v295_v35  ;;  %v324_v45 = vrot.slane %v231_v19, %v323_v39 }
  0x28   : > { %v259_v24 = vrot.slane %v258_v23, 2 }
  0x2a   : > { %v260_v25 = vadd.f32 %v259_v24, %v258_v23 }
  0x2b   : > { %247 = vadd.xlane.f32.xlu1 %v246_v11  ;;  %241 = vadd.xlane.f32.xlu0 %v240_v12 }
  0x2c   : > { %v261_v28 = vrot.slane %v260_v25, 1 }
  0x2e   : > { %v262_v32 = vadd.f32 %v261_v28, %v260_v25 }
  0x30   : > { %v263_v38 = vmul.f32 %v262_v32, %v249_v33 }
  0x3c   : > { %280 = vperm.xlu1 %500, %v270_v14  }
  0x40   : > { %285 = vperm.xlu1 %500, %v271_v15  }
  0x41   : > { %275 = vperm.xlu0 %499, %v269_v16  }
  0x44   : > { %501 = vset.pattern.permute.xlu1 %v558_v17 }
  0x45   : > { %306 = vperm.xlu1 %501, %v269_v16   ;;  %504 = vset.pattern.permute.xlu0 %v558_v17 }
  0x49   : > { %502 = vset.pattern.permute.xlu1 %v557_v0 }
  0x4a   : > { %290 = vperm.xlu1 %502, %v272_v18  }
  0x4e   : > { %503 = vset.pattern.permute.xlu1 %v558_v17 }
  0x4f   : > { %310 = vperm.xlu1 %503, %v270_v14  }
  0x53   : > { %314 = vperm.xlu1 %503, %v271_v15  }
  0x57   : > { %318 = vperm.xlu1 %503, %v272_v18  }
  0xb0   : > { %v245_v27 = vpop.xlane.xlu1 %244  ;;  %v239_v29 = vpop.xlane.xlu0 %238 }
  0xb1   : > { %v250_v34 = vmul.f32 %v249_v33, %v239_v29  ;;  %v252_v55 = vmul.f32 %v249_v33, %v245_v27 }
  0xb3   : > { %v264_v40 = vadd.f32 %v263_v38, %v250_v34  ;;  %v266_v60 = vadd.f32 %v263_v38, %v252_v55 }
  0xb4   : > { %v248_v31 = vpop.xlane.xlu1 %247  ;;  %v242_v36 = vpop.xlane.xlu0 %241 }
  0xb5   : > { %v251_v49 = vmul.f32 %v249_v33, %v242_v36  ;;  %v253_v61 = vmul.f32 %v249_v33, %v248_v31 }
  0xb7   : > { %v265_v53 = vadd.f32 %v263_v38, %v251_v49  ;;  %v267_v4 = vadd.f32 %v263_v38, %v253_v61 }
  0xb8   : > { %v281_v37 = vpop.permute.xlu1 %280 }
  0xb9   : > { %v298_v54 = vmul.f32 %v296_v41, %v281_v37 }
  0xbb   : > { %v302_v57 = vadd.f32 %v298_v54, %v265_v53 }
  0xbc   : > { %v286_v42 = vpop.permute.xlu1 %285  ;;  %v276_v43 = vpop.permute.xlu0 %275 }
  0xbd   : > { %v297_v44 = vmul.f32 %v296_v41, %v276_v43  ;;  %v299_v58 = vmul.f32 %v296_v41, %v286_v42 }
  0xbf   : > { %v301_v46 = vadd.f32 %v297_v44, %v264_v40  ;;  %v303_v0 = vadd.f32 %v299_v58, %v266_v60 }
  0xc0   : > { %v307_v47 = vpop.permute.xlu1 %306 }
  0xc1   : > { %v325_v48 = vmul.f32 %v324_v45, %v307_v47 }
  0xc3   : > { %v329_v50 = vadd.f32 %v325_v48, %v301_v46 }
  0xc5   : > { %v333_v51 = vmul.f32 1.442695, %v329_v50  ;;  %v291_v52 = vpop.permute.xlu1 %290 }
  0xc6   : > { %v300_v1 = vmul.f32 %v296_v41, %v291_v52 }
  0xc7   : > { %505 = vpow2.f32 %v333_v51 }
  0xc8   : > { %v304_v7 = vadd.f32 %v300_v1, %v267_v4 }
  0xca   : > { %v311_v56 = vpop.permute.xlu1 %310 }
  0xcb   : > { %v326_v59 = vmul.f32 %v324_v45, %v311_v56 }
  0xcd   : > { %v330_v62 = vadd.f32 %v326_v59, %v302_v57 }
  0xce   : > { %v315_v63 = vpop.permute.xlu1 %314 }
  0xcf   : > { %v335_v2 = vmul.f32 1.442695, %v330_v62  ;;  %v327_v3 = vmul.f32 %v324_v45, %v315_v63 }
  0xd1   : > { %507 = vpow2.f32 %v335_v2  ;;  %v331_v5 = vadd.f32 %v327_v3, %v303_v0 }
  0xd2   : > { %v319_v6 = vpop.permute.xlu1 %318 }
  0xd3   : > { %v337_v8 = vmul.f32 1.442695, %v331_v5  ;;  %v328_v9 = vmul.f32 %v324_v45, %v319_v6 }
  0xd4   : > { %v506_v10 = vpop.eup %505 }
  0xd5   : > { %341 = vst [vmem:[%s223_s8] sm:$0xff] %v506_v10  ;;  %509 = vpow2.f32 %v337_v8  ;;  %v332_v11 = vadd.f32 %v328_v9, %v304_v7 }
  0xd7   : > { %v339_v12 = vmul.f32 1.442695, %v332_v11 }
  0xd9   : > { %511 = vpow2.f32 %v339_v12 }
  0xde   : > { %v508_v13 = vpop.eup %507 }
  0xdf   : > { %342 = vst [vmem:[%s223_s8 + $0x8] sm:$0xff] %v508_v13 }
  0xe2   : > { %v510_v14 = vpop.eup %509 }
  0xe3   : > { %343 = vst [vmem:[%s223_s8 + $0x10] sm:$0xff] %v510_v14 }
  0xe6   : > { %v512_v15 = vpop.eup %511 }
  0xe7   : > { %344 = vst [vmem:[%s223_s8 + $0x18] sm:$0xff] %v512_v15 }
  0xe8 PF: > { %s14_s14 = sadd.s32 1, %s554_s14   ;;  %s653_s12 = smov %s550_s13 }
  0xe9   : > { %p11_p2 = scmp.ge.s32.totalorder %s14_s14, 4   ;;  %s654_s13 = smov %s656_s16 }
  0xeb   :  { %13 = sbr.rel (!%p11_p2) target bundleno = 2 (0x2), region = 70 }
  0xf0   :  { %373 = vsyncpa [#allocation3], 1 }
  0xf1   :  { %375 = vsyncpa [#allocation3 + $0x1], 1 }

</bundles_post_ra>
